<compile_context>
chip_gen: v6e
topology: v6e:2x2x1
jax: 0.10.0
libtpu: 0.0.40
codegen_flags: <defaults>
</compile_context>

<pallas_src>
import functools

import jax
import jax.numpy as jnp
from jax import lax
from jax.experimental import pallas as pl
from jax.experimental.pallas import tpu as pltpu

NEG_BIG = -9.0e15  # same masking constant as the PyTorch module


# --------------------------------------------------------------------------- #
# kernel                                                                      #
# --------------------------------------------------------------------------- #
def _gat_layer_kernel(x_ref, w_ref, asrc_ref, adstT_ref, mask_ref, o_ref,
                      fsrc_ref, *, alpha, nheads):
    tq = o_ref.shape[0]
    nf = o_ref.shape[1]
    fout = nf // nheads

    # ---- projection, all heads in one matmul (f32 so the logits stay exact;
    #      this matmul is O(N*Fin*nf) vs the O(tq*N*nf) attention work/tile). --
    h = jnp.dot(x_ref[...].astype(jnp.float32), w_ref[...],
                preferred_element_type=jnp.float32)            # (N, nheads*fout)
    h_bf = h.astype(jnp.bfloat16)                              # operand for att @ h

    # ---- attention-logit precursors, all heads in one push each -------------
    # f_src[:, hd] = h_head_hd . a_src_hd  (block-diagonal packed a_src)
    fsrc_ref[...] = jnp.dot(h, asrc_ref[...],
                            preferred_element_type=jnp.float32)  # (N, nheads)
    # f_dstT[hd, :] = h_head_hd[j] . a_dst_hd  for every key j -> (nheads, N)
    f_dstT = lax.dot_general(adstT_ref[...], h, (((1,), (1,)), ((), ())),
                             preferred_element_type=jnp.float32)

    row0 = pl.multiple_of(pl.program_id(0) * tq, tq)
    f_src = fsrc_ref[pl.ds(row0, tq), :]                       # (tq, nheads)
    mask = mask_ref[...] > 0                                   # (tq, N) from bf16 0/1

    outs = []
    for hd in range(nheads):                                   # static, tiny
        e = f_src[:, hd:hd + 1] + f_dstT[hd:hd + 1, :]         # (tq, N)
        e = jnp.where(e > 0, e, alpha * e)                     # LeakyReLU(alpha)
        # masked softmax over keys; scalar fill (no (N,N) NEG_BIG buffer).
        logits = jnp.where(mask, e, NEG_BIG)
        m = jnp.max(logits, axis=-1, keepdims=True)
        p = jnp.exp(logits - m)
        s = jnp.sum(p, axis=-1, keepdims=True)
        att = (p * pl.reciprocal(s, approx=True)).astype(jnp.bfloat16)  # EUP slot
        # TODO(synk): F.dropout on the attention matrix is stochastic; inference
        # (identity) semantics are used here.
        hp = jnp.dot(att, h_bf[:, hd * fout:(hd + 1) * fout],
                     preferred_element_type=jnp.float32)       # bf16 MXU, f32 acc
        # ELU(alpha=1); clamp avoids exp(+inf) on the unselected branch.
        outs.append(jnp.where(hp > 0, hp, jnp.exp(jnp.minimum(hp, 0.0)) - 1.0))

    # single store of the concatenated head slab.
    o_ref[...] = jnp.concatenate(outs, axis=-1).astype(o_ref.dtype)


# --------------------------------------------------------------------------- #
# per-layer wrapper                                                           #
# --------------------------------------------------------------------------- #
def _pick_row_tile(n):
    """Row-tile size: whole graph for small N, else a multiple-of-8 divisor of N
    that keeps the per-tile (tq, N) working set modest."""
    if n <= 256:
        return n
    limit = min(512, max(8, ((4 * 1024 * 1024) // (4 * n)) // 8 * 8))
    for t in range(limit, 7, -8):
        if n % t == 0:
            return t
    return n  # no aligned divisor; fall back to a single whole-graph tile


def _gat_layer(x, w_all, a_src, a_dstT, mask, *, alpha, nheads):
    N, fin = x.shape
    nf = w_all.shape[1]
    tq = _pick_row_tile(N)
    grid = (N // tq,)

    flops = int(grid[0] * (2 * N * fin * nf + 4 * N * nf * nheads)
                + 2 * N * N * nf + 10 * nheads * N * N)
    transcendentals = int(nheads * N * N + N * nf + nheads * N)
    bytes_accessed = int(4 * (x.size + w_all.size + a_src.size + a_dstT.size)
                         + 2 * mask.size + 4 * N * nf)

    vmem = int(4 * (N * fin + fin * nf + 2 * nf * nheads)  # resident inputs
               + 6 * N * nf                                # h (f32 + bf16)
               + 4 * N * 128 + 4 * nheads * N              # fsrc scratch / f_dstT
               + 2 * (2 * tq * N + 4 * tq * nf)            # double-buffered blocks
               + 8 * 4 * tq * N)                           # softmax temporaries
    vmem_limit = min(100 * 1024 * 1024, max(16 * 1024 * 1024, 2 * vmem))

    return pl.pallas_call(
        functools.partial(_gat_layer_kernel, alpha=alpha, nheads=nheads),
        out_shape=jax.ShapeDtypeStruct((N, nf), jnp.float32),
        grid_spec=pltpu.PrefetchScalarGridSpec(
            num_scalar_prefetch=0,
            grid=grid,
            in_specs=[
                pl.BlockSpec((N, fin), lambda i: (0, 0)),      # x        (resident)
                pl.BlockSpec((fin, nf), lambda i: (0, 0)),     # W_all    (resident)
                pl.BlockSpec((nf, nheads), lambda i: (0, 0)),  # A_src    (resident)
                pl.BlockSpec((nheads, nf), lambda i: (0, 0)),  # A_dstT   (resident)
                pl.BlockSpec((tq, N), lambda i: (i, 0)),       # mask     (streamed)
            ],
            out_specs=pl.BlockSpec((tq, nf), lambda i: (i, 0)),
            scratch_shapes=[pltpu.VMEM((N, nheads), jnp.float32)],
        ),
        compiler_params=pltpu.CompilerParams(
            dimension_semantics=("parallel",),
            vmem_limit_bytes=vmem_limit),
        cost_estimate=pl.CostEstimate(flops=flops,
                                      transcendentals=transcendentals,
                                      bytes_accessed=bytes_accessed),
    )(x, w_all, a_src, a_dstT, mask)


# --------------------------------------------------------------------------- #
# one-time packing (hoisted out of the ODE loop) + forward                    #
# --------------------------------------------------------------------------- #
def prepack_params(params, adj):
    """Pack per-head weights / attention vectors / adjacency once per solve."""
    W1, a1, W2, a2 = params
    _, _, dh = W1.shape
    _, _, dr = W2.shape

    def pack_layer(W, a, fout):
        nh = W.shape[0]
        w_all = jnp.transpose(W, (1, 0, 2)).reshape(W.shape[1], nh * fout)
        eye = jnp.eye(nh, dtype=jnp.float32)
        # block-diagonal packing: (h_all @ a_src)[:, hd] = h_hd . a_src_hd
        a_src = (a[:, :fout, 0][:, :, None] * eye[:, None, :]).reshape(nh * fout, nh)
        # (a_dstT contracted with h_all) gives row hd = f2 for head hd over all keys
        a_dstT = (eye[:, :, None] * a[:, fout:, 0][None, :, :]).reshape(nh, nh * fout)
        return (w_all.astype(jnp.float32), a_src.astype(jnp.float32),
                a_dstT.astype(jnp.float32))

    w1_all, a1_src, a1_dstT = pack_layer(W1, a1, dh)
    w2_all, a2_src, a2_dstT = pack_layer(W2, a2, dr)
    # only adj > 0 is ever used: ship a compact bf16 0/1 mask (half the f32 DMA).
    mask = (adj > 0).astype(jnp.bfloat16)
    return (w1_all, a1_src, a1_dstT, w2_all, a2_src, a2_dstT, mask)


def gat_ode_func_forward(t, x, packed, *, alpha, nheads):
    """Equivalent of GAT_Measures_Net_ode_func.forward(t, x) (inference)."""
    del t  # unused, as in the PyTorch module
    w1_all, a1_src, a1_dstT, w2_all, a2_src, a2_dstT, mask = packed
    x1 = _gat_layer(x, w1_all, a1_src, a1_dstT, mask, alpha=alpha, nheads=nheads)
    return _gat_layer(x1, w2_all, a2_src, a2_dstT, mask, alpha=alpha, nheads=nheads)


# --------------------------------------------------------------------------- #
# pure-JAX reference (loose numeric sanity check)                             #
# --------------------------------------------------------------------------- #
def _gat_layer_ref(x, adj, W, a, alpha):
    outs = []
    fout = W.shape[2]
    for hd in range(W.shape[0]):
        h = x @ W[hd]
        f1 = h @ a[hd, :fout, :]
        f2 = h @ a[hd, fout:, :]
        e = f1 + f2.T
        e = jnp.where(e > 0, e, alpha * e)
        logits = jnp.where(adj > 0, e, NEG_BIG)
        att = jax.nn.softmax(logits, axis=1)
        hp = att @ h
        outs.append(jnp.where(hp > 0, hp, jnp.exp(jnp.minimum(hp, 0.0)) - 1.0))
    return jnp.concatenate(outs, axis=1)


def _ref_forward(t, x, params, adj, alpha):
    del t
    W1, a1, W2, a2 = params
    x1 = _gat_layer_ref(x, adj, W1, a1, alpha)
    return _gat_layer_ref(x1, adj, W2, a2, alpha)


# --------------------------------------------------------------------------- #
# parameter init (matches nn.init.xavier_uniform_ with gain)                  #
# --------------------------------------------------------------------------- #
def _xavier_uniform(key, shape, gain):
    fan_in, fan_out = shape[-2], shape[-1]
    bound = gain * jnp.sqrt(6.0 / (fan_in + fan_out))
    return jax.random.uniform(key, shape, jnp.float32, -bound, bound)


def init_params(key, dim_feat, dim_hid, dim_readout, nheads, gain=1.414):
    k1, k2, k3, k4 = jax.random.split(key, 4)
    W1 = _xavier_uniform(k1, (nheads, dim_feat, dim_hid), gain)
    a1 = _xavier_uniform(k2, (nheads, 2 * dim_hid, 1), gain)
    W2 = _xavier_uniform(k3, (nheads, dim_hid * nheads, dim_readout), gain)
    a2 = _xavier_uniform(k4, (nheads, 2 * dim_readout, 1), gain)
    return (W1, a1, W2, a2)


if __name__ == "__main__":
    # small, module-consistent shapes
    N = 16            # number of graph nodes
    dim_feat = 8
    dim_hid = 16
    dim_readout = 8
    nheads = 2
    alpha = 0.2       # LeakyReLU negative slope
    dropout = 0.1     # unused (inference semantics)

    key = jax.random.PRNGKey(0)
    kx, kadj, kp = jax.random.split(key, 3)

    x = jax.random.normal(kx, (N, dim_feat), jnp.float32)
    adj = (jax.random.uniform(kadj, (N, N)) > 0.5).astype(jnp.float32)
    adj = jnp.maximum(adj, jnp.eye(N, dtype=jnp.float32))  # self-loops

    params = init_params(kp, dim_feat, dim_hid, dim_readout, nheads)
    packed = prepack_params(params, adj)   # hoisted: done once per ODE solve

    fwd = jax.jit(functools.partial(gat_ode_func_forward,
                                    alpha=alpha, nheads=nheads))
    t = jnp.float32(0.0)
    out = fwd(t, x, packed)
    jax.block_until_ready(out)

    assert out.shape == (N, dim_readout * nheads)
    assert out.dtype == jnp.float32

    # bf16 att@h operands + EUP approximate reciprocal -> loose tolerance.
    ref = _ref_forward(t, x, params, adj, alpha)
    assert jnp.allclose(out, ref, rtol=2e-2, atol=2e-2), "mismatch vs reference"

    # NOTE: at these demo sizes the call is pure fixed overhead; real workloads
    # should batch graphs / time-steps or run at larger N to exercise MXU/VPU.
    print("KERNEL_OK")
</pallas_src>

<mosaic_0001>
module attributes {stable_mosaic.version = 11 : i64} {
  func.func @_gat_layer_kernel(%arg0: i32, %arg1: memref<16x8xf32, #tpu.memory_space<vmem>>, %arg2: memref<8x32xf32, #tpu.memory_space<vmem>>, %arg3: memref<32x2xf32, #tpu.memory_space<vmem>>, %arg4: memref<2x32xf32, #tpu.memory_space<vmem>>, %arg5: memref<16x16xbf16, #tpu.memory_space<vmem>>, %arg6: memref<16x32xf32, #tpu.memory_space<vmem>>, %arg7: memref<16x2xf32, #tpu.memory_space<vmem>>) attributes {dimension_semantics = [#tpu.dimension_semantics<parallel>], iteration_bounds = array<i64: 1>, scalar_prefetch = 0 : i64, scratch_operands = 1 : i64, tpu.core_type = #tpu.core_type<tc>, window_params = [{pipeline_mode = #tpu.pipeline_mode<synchronous>, transform_indices = @transform_0, window_bounds = array<i64: 16, 8>}, {pipeline_mode = #tpu.pipeline_mode<synchronous>, transform_indices = @transform_1, window_bounds = array<i64: 8, 32>}, {pipeline_mode = #tpu.pipeline_mode<synchronous>, transform_indices = @transform_2, window_bounds = array<i64: 32, 2>}, {pipeline_mode = #tpu.pipeline_mode<synchronous>, transform_indices = @transform_3, window_bounds = array<i64: 2, 32>}, {transform_indices = @transform_4, window_bounds = array<i64: 16, 16>}, {transform_indices = @transform_5, window_bounds = array<i64: 16, 32>}]} {
    %c0 = arith.constant 0 : index
    %c0_0 = arith.constant 0 : index
    %0 = vector.load %arg1[%c0, %c0_0] : memref<16x8xf32, #tpu.memory_space<vmem>>, vector<16x8xf32>
    %c0_1 = arith.constant 0 : index
    %c0_2 = arith.constant 0 : index
    %1 = vector.load %arg2[%c0_1, %c0_2] : memref<8x32xf32, #tpu.memory_space<vmem>>, vector<8x32xf32>
    %cst = arith.constant dense<0.000000e+00> : vector<16x32xf32>
    %2 = tpu.matmul %0, %1, %cst {dimension_numbers = #tpu.dot_dimension_numbers<[1], [0], [0], [1], [0, 0, 1, 1], [], []>} : vector<16x8xf32>, vector<8x32xf32>, vector<16x32xf32> -> vector<16x32xf32>
    %3 = arith.truncf %2 : vector<16x32xf32> to vector<16x32xbf16>
    %c0_3 = arith.constant 0 : index
    %c0_4 = arith.constant 0 : index
    %4 = vector.load %arg3[%c0_3, %c0_4] : memref<32x2xf32, #tpu.memory_space<vmem>>, vector<32x2xf32>
    %cst_5 = arith.constant dense<0.000000e+00> : vector<16x2xf32>
    %5 = tpu.matmul %2, %4, %cst_5 {dimension_numbers = #tpu.dot_dimension_numbers<[1], [0], [0], [1], [0, 0, 1, 1], [], []>} : vector<16x32xf32>, vector<32x2xf32>, vector<16x2xf32> -> vector<16x2xf32>
    %c0_6 = arith.constant 0 : index
    %c0_7 = arith.constant 0 : index
    %6 = vector.load %arg7[%c0_6, %c0_7] : memref<16x2xf32, #tpu.memory_space<vmem>>, vector<16x2xf32>
    tpu.vector_store %arg7[%c0_6, %c0_7], %5 {strides = array<i32>} : memref<16x2xf32, #tpu.memory_space<vmem>>, vector<16x2xf32>,
    %c0_8 = arith.constant 0 : index
    %c0_9 = arith.constant 0 : index
    %7 = vector.load %arg4[%c0_8, %c0_9] : memref<2x32xf32, #tpu.memory_space<vmem>>, vector<2x32xf32>
    %cst_10 = arith.constant dense<0.000000e+00> : vector<2x16xf32>
    %8 = tpu.matmul %7, %2, %cst_10 {dimension_numbers = #tpu.dot_dimension_numbers<[1], [1], [0], [0], [0, 0, 1, 0], [], []>} : vector<2x32xf32>, vector<16x32xf32>, vector<2x16xf32> -> vector<2x16xf32>
    %c16_i32 = arith.constant 16 : i32
    %9 = arith.muli %arg0, %c16_i32 : i32
    %10 = tpu.assume_multiple %9, 16 : i32
    %11 = arith.index_cast %10 : i32 to index
    %c0_11 = arith.constant 0 : index
    %12 = vector.load %arg7[%11, %c0_11] : memref<16x2xf32, #tpu.memory_space<vmem>>, vector<16x2xf32>
    %c0_12 = arith.constant 0 : index
    %c0_13 = arith.constant 0 : index
    %13 = vector.load %arg5[%c0_12, %c0_13] : memref<16x16xbf16, #tpu.memory_space<vmem>>, vector<16x16xbf16>
    %cst_14 = arith.constant 0.000000e+00 : bf16
    %14 = vector.broadcast %cst_14 : bf16 to vector<16x16xbf16>
    %15 = arith.cmpf ogt, %13, %14 : vector<16x16xbf16>
    %16 = vector.extract_strided_slice %12 {offsets = [0, 0], sizes = [16, 1], strides = [1, 1]} : vector<16x2xf32> to vector<16x1xf32>
    %17 = vector.extract_strided_slice %8 {offsets = [0, 0], sizes = [1, 16], strides = [1, 1]} : vector<2x16xf32> to vector<1x16xf32>
    %18 = vector.broadcast %16 : vector<16x1xf32> to vector<16x16xf32>
    %19 = vector.broadcast %17 : vector<1x16xf32> to vector<16x16xf32>
    %20 = arith.addf %18, %19 : vector<16x16xf32>
    %cst_15 = arith.constant 0.000000e+00 : f32
    %21 = vector.broadcast %cst_15 : f32 to vector<16x16xf32>
    %22 = arith.cmpf ogt, %20, %21 : vector<16x16xf32>
    %cst_16 = arith.constant 2.000000e-01 : f32
    %23 = vector.broadcast %cst_16 : f32 to vector<16x16xf32>
    %24 = arith.mulf %23, %20 : vector<16x16xf32>
    %25 = arith.select %22, %20, %24 : vector<16x16xi1>, vector<16x16xf32>
    %cst_17 = arith.constant -9.000000e+15 : f32
    %26 = vector.broadcast %cst_17 : f32 to vector<16x16xf32>
    %27 = arith.select %15, %25, %26 : vector<16x16xi1>, vector<16x16xf32>
    %cst_18 = arith.constant dense<0xFF800000> : vector<16xf32>
    %28 = vector.multi_reduction <maximumf>, %27, %cst_18 [1] : vector<16x16xf32> to vector<16xf32>
    %29 = vector.shape_cast %28 : vector<16xf32> to vector<16x1xf32>
    %30 = vector.broadcast %29 : vector<16x1xf32> to vector<16x16xf32>
    %31 = arith.subf %27, %30 : vector<16x16xf32>
    %32 = math.exp %31 : vector<16x16xf32>
    %cst_19 = arith.constant dense<0.000000e+00> : vector<16xf32>
    %33 = vector.multi_reduction <add>, %32, %cst_19 [1] : vector<16x16xf32> to vector<16xf32>
    %34 = vector.shape_cast %33 : vector<16xf32> to vector<16x1xf32>
    %35 = tpu.reciprocal %34 {approx = true} : vector<16x1xf32> -> vector<16x1xf32>
    %36 = vector.broadcast %35 : vector<16x1xf32> to vector<16x16xf32>
    %37 = arith.mulf %32, %36 : vector<16x16xf32>
    %38 = arith.truncf %37 : vector<16x16xf32> to vector<16x16xbf16>
    %39 = vector.extract_strided_slice %3 {offsets = [0, 0], sizes = [16, 16], strides = [1, 1]} : vector<16x32xbf16> to vector<16x16xbf16>
    %cst_20 = arith.constant dense<0.000000e+00> : vector<16x16xf32>
    %40 = tpu.matmul %38, %39, %cst_20 {dimension_numbers = #tpu.dot_dimension_numbers<[1], [0], [0], [1], [0, 0, 1, 1], [], []>} : vector<16x16xbf16>, vector<16x16xbf16>, vector<16x16xf32> -> vector<16x16xf32>
    %cst_21 = arith.constant 0.000000e+00 : f32
    %41 = vector.broadcast %cst_21 : f32 to vector<16x16xf32>
    %42 = arith.cmpf ogt, %40, %41 : vector<16x16xf32>
    %cst_22 = arith.constant 0.000000e+00 : f32
    %43 = vector.broadcast %cst_22 : f32 to vector<16x16xf32>
    %44 = arith.minimumf %40, %43 : vector<16x16xf32>
    %45 = math.exp %44 : vector<16x16xf32>
    %cst_23 = arith.constant 1.000000e+00 : f32
    %46 = vector.broadcast %cst_23 : f32 to vector<16x16xf32>
    %47 = arith.subf %45, %46 : vector<16x16xf32>
    %48 = arith.select %42, %40, %47 : vector<16x16xi1>, vector<16x16xf32>
    %49 = vector.extract_strided_slice %12 {offsets = [0, 1], sizes = [16, 1], strides = [1, 1]} : vector<16x2xf32> to vector<16x1xf32>
    %50 = vector.extract_strided_slice %8 {offsets = [1, 0], sizes = [1, 16], strides = [1, 1]} : vector<2x16xf32> to vector<1x16xf32>
    %51 = vector.broadcast %49 : vector<16x1xf32> to vector<16x16xf32>
    %52 = vector.broadcast %50 : vector<1x16xf32> to vector<16x16xf32>
    %53 = arith.addf %51, %52 : vector<16x16xf32>
    %cst_24 = arith.constant 0.000000e+00 : f32
    %54 = vector.broadcast %cst_24 : f32 to vector<16x16xf32>
    %55 = arith.cmpf ogt, %53, %54 : vector<16x16xf32>
    %cst_25 = arith.constant 2.000000e-01 : f32
    %56 = vector.broadcast %cst_25 : f32 to vector<16x16xf32>
    %57 = arith.mulf %56, %53 : vector<16x16xf32>
    %58 = arith.select %55, %53, %57 : vector<16x16xi1>, vector<16x16xf32>
    %cst_26 = arith.constant -9.000000e+15 : f32
    %59 = vector.broadcast %cst_26 : f32 to vector<16x16xf32>
    %60 = arith.select %15, %58, %59 : vector<16x16xi1>, vector<16x16xf32>
    %cst_27 = arith.constant dense<0xFF800000> : vector<16xf32>
    %61 = vector.multi_reduction <maximumf>, %60, %cst_27 [1] : vector<16x16xf32> to vector<16xf32>
    %62 = vector.shape_cast %61 : vector<16xf32> to vector<16x1xf32>
    %63 = vector.broadcast %62 : vector<16x1xf32> to vector<16x16xf32>
    %64 = arith.subf %60, %63 : vector<16x16xf32>
    %65 = math.exp %64 : vector<16x16xf32>
    %cst_28 = arith.constant dense<0.000000e+00> : vector<16xf32>
    %66 = vector.multi_reduction <add>, %65, %cst_28 [1] : vector<16x16xf32> to vector<16xf32>
    %67 = vector.shape_cast %66 : vector<16xf32> to vector<16x1xf32>
    %68 = tpu.reciprocal %67 {approx = true} : vector<16x1xf32> -> vector<16x1xf32>
    %69 = vector.broadcast %68 : vector<16x1xf32> to vector<16x16xf32>
    %70 = arith.mulf %65, %69 : vector<16x16xf32>
    %71 = arith.truncf %70 : vector<16x16xf32> to vector<16x16xbf16>
    %72 = vector.extract_strided_slice %3 {offsets = [0, 16], sizes = [16, 16], strides = [1, 1]} : vector<16x32xbf16> to vector<16x16xbf16>
    %cst_29 = arith.constant dense<0.000000e+00> : vector<16x16xf32>
    %73 = tpu.matmul %71, %72, %cst_29 {dimension_numbers = #tpu.dot_dimension_numbers<[1], [0], [0], [1], [0, 0, 1, 1], [], []>} : vector<16x16xbf16>, vector<16x16xbf16>, vector<16x16xf32> -> vector<16x16xf32>
    %cst_30 = arith.constant 0.000000e+00 : f32
    %74 = vector.broadcast %cst_30 : f32 to vector<16x16xf32>
    %75 = arith.cmpf ogt, %73, %74 : vector<16x16xf32>
    %cst_31 = arith.constant 0.000000e+00 : f32
    %76 = vector.broadcast %cst_31 : f32 to vector<16x16xf32>
    %77 = arith.minimumf %73, %76 : vector<16x16xf32>
    %78 = math.exp %77 : vector<16x16xf32>
    %cst_32 = arith.constant 1.000000e+00 : f32
    %79 = vector.broadcast %cst_32 : f32 to vector<16x16xf32>
    %80 = arith.subf %78, %79 : vector<16x16xf32>
    %81 = arith.select %75, %73, %80 : vector<16x16xi1>, vector<16x16xf32>
    %82 = tpu.concatenate %48, %81 in 1 : vector<16x16xf32>, vector<16x16xf32> -> vector<16x32xf32>
    %c0_33 = arith.constant 0 : index
    %c0_34 = arith.constant 0 : index
    %83 = vector.load %arg6[%c0_33, %c0_34] : memref<16x32xf32, #tpu.memory_space<vmem>>, vector<16x32xf32>
    tpu.vector_store %arg6[%c0_33, %c0_34], %82 {strides = array<i32>} : memref<16x32xf32, #tpu.memory_space<vmem>>, vector<16x32xf32>,
    return
  }
  func.func @transform_0(%arg0: i32) -> (i32, i32) {
    %c0_i32 = arith.constant 0 : i32
    %c0_i32_0 = arith.constant 0 : i32
    %c0_i32_1 = arith.constant 0 : i32
    return %c0_i32, %c0_i32_0 : i32, i32
  }
  func.func @transform_1(%arg0: i32) -> (i32, i32) {
    %c0_i32 = arith.constant 0 : i32
    %c0_i32_0 = arith.constant 0 : i32
    %c0_i32_1 = arith.constant 0 : i32
    return %c0_i32, %c0_i32_0 : i32, i32
  }
  func.func @transform_2(%arg0: i32) -> (i32, i32) {
    %c0_i32 = arith.constant 0 : i32
    %c0_i32_0 = arith.constant 0 : i32
    %c0_i32_1 = arith.constant 0 : i32
    return %c0_i32, %c0_i32_0 : i32, i32
  }
  func.func @transform_3(%arg0: i32) -> (i32, i32) {
    %c0_i32 = arith.constant 0 : i32
    %c0_i32_0 = arith.constant 0 : i32
    %c0_i32_1 = arith.constant 0 : i32
    return %c0_i32, %c0_i32_0 : i32, i32
  }
  func.func @transform_4(%arg0: i32) -> (i32, i32) {
    %c0_i32 = arith.constant 0 : i32
    %c0_i32_0 = arith.constant 0 : i32
    return %arg0, %c0_i32 : i32, i32
  }
  func.func @transform_5(%arg0: i32) -> (i32, i32) {
    %c0_i32 = arith.constant 0 : i32
    %c0_i32_0 = arith.constant 0 : i32
    return %arg0, %c0_i32 : i32, i32
  }
}

module attributes {stable_mosaic.version = 11 : i64} {
  func.func @_gat_layer_kernel(%arg0: i32, %arg1: memref<16x32xf32, #tpu.memory_space<vmem>>, %arg2: memref<32x16xf32, #tpu.memory_space<vmem>>, %arg3: memref<16x2xf32, #tpu.memory_space<vmem>>, %arg4: memref<2x16xf32, #tpu.memory_space<vmem>>, %arg5: memref<16x16xbf16, #tpu.memory_space<vmem>>, %arg6: memref<16x16xf32, #tpu.memory_space<vmem>>, %arg7: memref<16x2xf32, #tpu.memory_space<vmem>>) attributes {dimension_semantics = [#tpu.dimension_semantics<parallel>], iteration_bounds = array<i64: 1>, scalar_prefetch = 0 : i64, scratch_operands = 1 : i64, tpu.core_type = #tpu.core_type<tc>, window_params = [{pipeline_mode = #tpu.pipeline_mode<synchronous>, transform_indices = @transform_0, window_bounds = array<i64: 16, 32>}, {pipeline_mode = #tpu.pipeline_mode<synchronous>, transform_indices = @transform_1, window_bounds = array<i64: 32, 16>}, {pipeline_mode = #tpu.pipeline_mode<synchronous>, transform_indices = @transform_2, window_bounds = array<i64: 16, 2>}, {pipeline_mode = #tpu.pipeline_mode<synchronous>, transform_indices = @transform_3, window_bounds = array<i64: 2, 16>}, {transform_indices = @transform_4, window_bounds = array<i64: 16, 16>}, {transform_indices = @transform_5, window_bounds = array<i64: 16, 16>}]} {
    %c0 = arith.constant 0 : index
    %c0_0 = arith.constant 0 : index
    %0 = vector.load %arg1[%c0, %c0_0] : memref<16x32xf32, #tpu.memory_space<vmem>>, vector<16x32xf32>
    %c0_1 = arith.constant 0 : index
    %c0_2 = arith.constant 0 : index
    %1 = vector.load %arg2[%c0_1, %c0_2] : memref<32x16xf32, #tpu.memory_space<vmem>>, vector<32x16xf32>
    %cst = arith.constant dense<0.000000e+00> : vector<16x16xf32>
    %2 = tpu.matmul %0, %1, %cst {dimension_numbers = #tpu.dot_dimension_numbers<[1], [0], [0], [1], [0, 0, 1, 1], [], []>} : vector<16x32xf32>, vector<32x16xf32>, vector<16x16xf32> -> vector<16x16xf32>
    %3 = arith.truncf %2 : vector<16x16xf32> to vector<16x16xbf16>
    %c0_3 = arith.constant 0 : index
    %c0_4 = arith.constant 0 : index
    %4 = vector.load %arg3[%c0_3, %c0_4] : memref<16x2xf32, #tpu.memory_space<vmem>>, vector<16x2xf32>
    %cst_5 = arith.constant dense<0.000000e+00> : vector<16x2xf32>
    %5 = tpu.matmul %2, %4, %cst_5 {dimension_numbers = #tpu.dot_dimension_numbers<[1], [0], [0], [1], [0, 0, 1, 1], [], []>} : vector<16x16xf32>, vector<16x2xf32>, vector<16x2xf32> -> vector<16x2xf32>
    %c0_6 = arith.constant 0 : index
    %c0_7 = arith.constant 0 : index
    %6 = vector.load %arg7[%c0_6, %c0_7] : memref<16x2xf32, #tpu.memory_space<vmem>>, vector<16x2xf32>
    tpu.vector_store %arg7[%c0_6, %c0_7], %5 {strides = array<i32>} : memref<16x2xf32, #tpu.memory_space<vmem>>, vector<16x2xf32>,
    %c0_8 = arith.constant 0 : index
    %c0_9 = arith.constant 0 : index
    %7 = vector.load %arg4[%c0_8, %c0_9] : memref<2x16xf32, #tpu.memory_space<vmem>>, vector<2x16xf32>
    %cst_10 = arith.constant dense<0.000000e+00> : vector<2x16xf32>
    %8 = tpu.matmul %7, %2, %cst_10 {dimension_numbers = #tpu.dot_dimension_numbers<[1], [1], [0], [0], [0, 0, 1, 0], [], []>} : vector<2x16xf32>, vector<16x16xf32>, vector<2x16xf32> -> vector<2x16xf32>
    %c16_i32 = arith.constant 16 : i32
    %9 = arith.muli %arg0, %c16_i32 : i32
    %10 = tpu.assume_multiple %9, 16 : i32
    %11 = arith.index_cast %10 : i32 to index
    %c0_11 = arith.constant 0 : index
    %12 = vector.load %arg7[%11, %c0_11] : memref<16x2xf32, #tpu.memory_space<vmem>>, vector<16x2xf32>
    %c0_12 = arith.constant 0 : index
    %c0_13 = arith.constant 0 : index
    %13 = vector.load %arg5[%c0_12, %c0_13] : memref<16x16xbf16, #tpu.memory_space<vmem>>, vector<16x16xbf16>
    %cst_14 = arith.constant 0.000000e+00 : bf16
    %14 = vector.broadcast %cst_14 : bf16 to vector<16x16xbf16>
    %15 = arith.cmpf ogt, %13, %14 : vector<16x16xbf16>
    %16 = vector.extract_strided_slice %12 {offsets = [0, 0], sizes = [16, 1], strides = [1, 1]} : vector<16x2xf32> to vector<16x1xf32>
    %17 = vector.extract_strided_slice %8 {offsets = [0, 0], sizes = [1, 16], strides = [1, 1]} : vector<2x16xf32> to vector<1x16xf32>
    %18 = vector.broadcast %16 : vector<16x1xf32> to vector<16x16xf32>
    %19 = vector.broadcast %17 : vector<1x16xf32> to vector<16x16xf32>
    %20 = arith.addf %18, %19 : vector<16x16xf32>
    %cst_15 = arith.constant 0.000000e+00 : f32
    %21 = vector.broadcast %cst_15 : f32 to vector<16x16xf32>
    %22 = arith.cmpf ogt, %20, %21 : vector<16x16xf32>
    %cst_16 = arith.constant 2.000000e-01 : f32
    %23 = vector.broadcast %cst_16 : f32 to vector<16x16xf32>
    %24 = arith.mulf %23, %20 : vector<16x16xf32>
    %25 = arith.select %22, %20, %24 : vector<16x16xi1>, vector<16x16xf32>
    %cst_17 = arith.constant -9.000000e+15 : f32
    %26 = vector.broadcast %cst_17 : f32 to vector<16x16xf32>
    %27 = arith.select %15, %25, %26 : vector<16x16xi1>, vector<16x16xf32>
    %cst_18 = arith.constant dense<0xFF800000> : vector<16xf32>
    %28 = vector.multi_reduction <maximumf>, %27, %cst_18 [1] : vector<16x16xf32> to vector<16xf32>
    %29 = vector.shape_cast %28 : vector<16xf32> to vector<16x1xf32>
    %30 = vector.broadcast %29 : vector<16x1xf32> to vector<16x16xf32>
    %31 = arith.subf %27, %30 : vector<16x16xf32>
    %32 = math.exp %31 : vector<16x16xf32>
    %cst_19 = arith.constant dense<0.000000e+00> : vector<16xf32>
    %33 = vector.multi_reduction <add>, %32, %cst_19 [1] : vector<16x16xf32> to vector<16xf32>
    %34 = vector.shape_cast %33 : vector<16xf32> to vector<16x1xf32>
    %35 = tpu.reciprocal %34 {approx = true} : vector<16x1xf32> -> vector<16x1xf32>
    %36 = vector.broadcast %35 : vector<16x1xf32> to vector<16x16xf32>
    %37 = arith.mulf %32, %36 : vector<16x16xf32>
    %38 = arith.truncf %37 : vector<16x16xf32> to vector<16x16xbf16>
    %39 = vector.extract_strided_slice %3 {offsets = [0, 0], sizes = [16, 8], strides = [1, 1]} : vector<16x16xbf16> to vector<16x8xbf16>
    %cst_20 = arith.constant dense<0.000000e+00> : vector<16x8xf32>
    %40 = tpu.matmul %38, %39, %cst_20 {dimension_numbers = #tpu.dot_dimension_numbers<[1], [0], [0], [1], [0, 0, 1, 1], [], []>} : vector<16x16xbf16>, vector<16x8xbf16>, vector<16x8xf32> -> vector<16x8xf32>
    %cst_21 = arith.constant 0.000000e+00 : f32
    %41 = vector.broadcast %cst_21 : f32 to vector<16x8xf32>
    %42 = arith.cmpf ogt, %40, %41 : vector<16x8xf32>
    %cst_22 = arith.constant 0.000000e+00 : f32
    %43 = vector.broadcast %cst_22 : f32 to vector<16x8xf32>
    %44 = arith.minimumf %40, %43 : vector<16x8xf32>
    %45 = math.exp %44 : vector<16x8xf32>
    %cst_23 = arith.constant 1.000000e+00 : f32
    %46 = vector.broadcast %cst_23 : f32 to vector<16x8xf32>
    %47 = arith.subf %45, %46 : vector<16x8xf32>
    %48 = arith.select %42, %40, %47 : vector<16x8xi1>, vector<16x8xf32>
    %49 = vector.extract_strided_slice %12 {offsets = [0, 1], sizes = [16, 1], strides = [1, 1]} : vector<16x2xf32> to vector<16x1xf32>
    %50 = vector.extract_strided_slice %8 {offsets = [1, 0], sizes = [1, 16], strides = [1, 1]} : vector<2x16xf32> to vector<1x16xf32>
    %51 = vector.broadcast %49 : vector<16x1xf32> to vector<16x16xf32>
    %52 = vector.broadcast %50 : vector<1x16xf32> to vector<16x16xf32>
    %53 = arith.addf %51, %52 : vector<16x16xf32>
    %cst_24 = arith.constant 0.000000e+00 : f32
    %54 = vector.broadcast %cst_24 : f32 to vector<16x16xf32>
    %55 = arith.cmpf ogt, %53, %54 : vector<16x16xf32>
    %cst_25 = arith.constant 2.000000e-01 : f32
    %56 = vector.broadcast %cst_25 : f32 to vector<16x16xf32>
    %57 = arith.mulf %56, %53 : vector<16x16xf32>
    %58 = arith.select %55, %53, %57 : vector<16x16xi1>, vector<16x16xf32>
    %cst_26 = arith.constant -9.000000e+15 : f32
    %59 = vector.broadcast %cst_26 : f32 to vector<16x16xf32>
    %60 = arith.select %15, %58, %59 : vector<16x16xi1>, vector<16x16xf32>
    %cst_27 = arith.constant dense<0xFF800000> : vector<16xf32>
    %61 = vector.multi_reduction <maximumf>, %60, %cst_27 [1] : vector<16x16xf32> to vector<16xf32>
    %62 = vector.shape_cast %61 : vector<16xf32> to vector<16x1xf32>
    %63 = vector.broadcast %62 : vector<16x1xf32> to vector<16x16xf32>
    %64 = arith.subf %60, %63 : vector<16x16xf32>
    %65 = math.exp %64 : vector<16x16xf32>
    %cst_28 = arith.constant dense<0.000000e+00> : vector<16xf32>
    %66 = vector.multi_reduction <add>, %65, %cst_28 [1] : vector<16x16xf32> to vector<16xf32>
    %67 = vector.shape_cast %66 : vector<16xf32> to vector<16x1xf32>
    %68 = tpu.reciprocal %67 {approx = true} : vector<16x1xf32> -> vector<16x1xf32>
    %69 = vector.broadcast %68 : vector<16x1xf32> to vector<16x16xf32>
    %70 = arith.mulf %65, %69 : vector<16x16xf32>
    %71 = arith.truncf %70 : vector<16x16xf32> to vector<16x16xbf16>
    %72 = vector.extract_strided_slice %3 {offsets = [0, 8], sizes = [16, 8], strides = [1, 1]} : vector<16x16xbf16> to vector<16x8xbf16>
    %cst_29 = arith.constant dense<0.000000e+00> : vector<16x8xf32>
    %73 = tpu.matmul %71, %72, %cst_29 {dimension_numbers = #tpu.dot_dimension_numbers<[1], [0], [0], [1], [0, 0, 1, 1], [], []>} : vector<16x16xbf16>, vector<16x8xbf16>, vector<16x8xf32> -> vector<16x8xf32>
    %cst_30 = arith.constant 0.000000e+00 : f32
    %74 = vector.broadcast %cst_30 : f32 to vector<16x8xf32>
    %75 = arith.cmpf ogt, %73, %74 : vector<16x8xf32>
    %cst_31 = arith.constant 0.000000e+00 : f32
    %76 = vector.broadcast %cst_31 : f32 to vector<16x8xf32>
    %77 = arith.minimumf %73, %76 : vector<16x8xf32>
    %78 = math.exp %77 : vector<16x8xf32>
    %cst_32 = arith.constant 1.000000e+00 : f32
    %79 = vector.broadcast %cst_32 : f32 to vector<16x8xf32>
    %80 = arith.subf %78, %79 : vector<16x8xf32>
    %81 = arith.select %75, %73, %80 : vector<16x8xi1>, vector<16x8xf32>
    %82 = tpu.concatenate %48, %81 in 1 : vector<16x8xf32>, vector<16x8xf32> -> vector<16x16xf32>
    %c0_33 = arith.constant 0 : index
    %c0_34 = arith.constant 0 : index
    %83 = vector.load %arg6[%c0_33, %c0_34] : memref<16x16xf32, #tpu.memory_space<vmem>>, vector<16x16xf32>
    tpu.vector_store %arg6[%c0_33, %c0_34], %82 {strides = array<i32>} : memref<16x16xf32, #tpu.memory_space<vmem>>, vector<16x16xf32>,
    return
  }
  func.func @transform_0(%arg0: i32) -> (i32, i32) {
    %c0_i32 = arith.constant 0 : i32
    %c0_i32_0 = arith.constant 0 : i32
    %c0_i32_1 = arith.constant 0 : i32
    return %c0_i32, %c0_i32_0 : i32, i32
  }
  func.func @transform_1(%arg0: i32) -> (i32, i32) {
    %c0_i32 = arith.constant 0 : i32
    %c0_i32_0 = arith.constant 0 : i32
    %c0_i32_1 = arith.constant 0 : i32
    return %c0_i32, %c0_i32_0 : i32, i32
  }
  func.func @transform_2(%arg0: i32) -> (i32, i32) {
    %c0_i32 = arith.constant 0 : i32
    %c0_i32_0 = arith.constant 0 : i32
    %c0_i32_1 = arith.constant 0 : i32
    return %c0_i32, %c0_i32_0 : i32, i32
  }
  func.func @transform_3(%arg0: i32) -> (i32, i32) {
    %c0_i32 = arith.constant 0 : i32
    %c0_i32_0 = arith.constant 0 : i32
    %c0_i32_1 = arith.constant 0 : i32
    return %c0_i32, %c0_i32_0 : i32, i32
  }
  func.func @transform_4(%arg0: i32) -> (i32, i32) {
    %c0_i32 = arith.constant 0 : i32
    %c0_i32_0 = arith.constant 0 : i32
    return %arg0, %c0_i32 : i32, i32
  }
  func.func @transform_5(%arg0: i32) -> (i32, i32) {
    %c0_i32 = arith.constant 0 : i32
    %c0_i32_0 = arith.constant 0 : i32
    return %arg0, %c0_i32 : i32, i32
  }
}

</mosaic_0001>

<bundles_post_ra>
// kernel: gat_ode_func_forward.2
= control target key start
LH: loop header
LB: loop body
LE: loop exit
PB: predicated region body
PF: predicated region fallthrough
CT: control target
= control target key end

     0   :  { %vm26_vm0 = vcmask 64512   ;;  %v607_v6 = vmov 0.0   ;;  %vm608_vm1 = vmmov 0   ;;  %vm113_vm2 = vcmask 261120   ;;  %s612_s9 = smov 16   ;;  %s713_s1 = inlined_call_operand.vmem [shape: f32[8,32], index: 1, kind: input, shape index: {}]   ;;  %s714_s0 = inlined_call_operand.vmem [shape: f32[16,8], index: 0, kind: input, shape index: {}]   ;;  %s715_s2 = inlined_call_operand.vmem [shape: f32[32,2], index: 2, kind: input, shape index: {}]   ;;  %s716_s3 = inlined_call_operand.vmem [shape: f32[2,32], index: 3, kind: input, shape index: {}]   ;;  %s717_s4 = inlined_call_operand.vmem [shape: bf16[16,16], index: 4, kind: input, shape index: {}]   ;;  %s718_s5 = inlined_call_operand.vmem [shape: f32[16,32], index: 5, kind: output, shape index: {}]  }
   0x1   :  { %v25_v0 = vld [vmem:[%s713_s1] sm:$0xff]  ;;  %v24_v2 = vld [vmem:[%s714_s0 + $0x8] sm:$0xff]  ;;  %v112_v3 = vld [vmem:[%s715_s2 + $0x18] sm:$0xff]  ;;  %v609_v12 = vmov 0   ;;  %v610_v13 = vmov 1   ;;  %vm195_vm3 = vcmask 15360   ;;  %v290_v20 = vlaneseq }
   0x2   :  { %v23_v1 = vld [vmem:[%s714_s0] sm:$0xff]  ;;  %540 = vmatprep.subr.mxu0 %v25_v0  ;;  %v111_v4 = vld [vmem:[%s715_s2 + $0x10] sm:$0xff]  ;;  %545 = vmatprep.subr.mxu1 %v112_v3  ;;  %v110_v5 = vld [vmem:[%s715_s2 + $0x8] sm:$0xff]  ;;  %vm310_vm9 = vcmask 130048  }
   0x3   :  { %542 = vmatprep.mubr.msk.f32.mxu0 %vm26_vm0, %v23_v1  ;;  %541 = vmatpush3.msra.mxu0 %v25_v0  ;;  %v109_v7 = vld [vmem:[%s715_s2] sm:$0xff]  ;;  %v291_v21 = vshrl.u32 %v290_v20, 7 }
   0x4   :  { %543 = vmatmul.mubr.msk.f32.vlgmr.msra.gmra.mxu0 %vm26_vm0, %v24_v2  ;;  %546 = vmatpush3.msra.mxu1 %v112_v3  ;;  %v198_v11 = vld [vmem:[%s716_s3] sm:$0x3]  ;;  %v277_v25 = vld [vmem:[%s717_s4 + $0x4] sm:$0xf] }
   0x5   :  { %547 = vmatprep.subr.mxu1 %v111_v4  ;;  %556 = vmatprep.subr.mxu0 %v607_v6  ;;  %v276_v22 = vld [vmem:[%s717_s4] sm:$0xf]  ;;  %v292_v23 = vsub.s32 0, %v291_v21  ;;  %v400_v24 = vsub.s32 1, %v291_v21  ;;  %vm279_vm5 = vcmp.gt.bf16.partialorder %v277_v25, 0  ;;  %s611_s4 = smov 112  }
   0x6   :  { %548 = vmatpush3.msra.mxu1 %v111_v4  ;;  %560 = vmatprep.mubr.msk.f32.mxu0 %vm608_vm1, %v607_v6  ;;  %vm278_vm4 = vcmp.gt.bf16.partialorder %v276_v22, 0  ;;  %v303_v34 = vsel %vm279_vm5, 65537, %v609_v12 }
   0x7   :  { %549 = vmatprep.subr.mxu1 %v110_v5  ;;  %582 = vset.pattern.permute.xlu1 %v609_v12  ;;  %v302_v27 = vsel %vm278_vm4, 65537, %v609_v12  ;;  %v305_v41 = vunpack.c.l.b16 %v303_v34 }
   0x8   :  { %550 = vmatpush3.msra.mxu1 %v110_v5  ;;  %581 = vset.pattern.permute.xlu0 %v610_v13  ;;  %v304_v30 = vunpack.c.l.b16 %v302_v27 }
   0x9   :  { %551 = vmatprep.subr.mxu1 %v109_v7  ;;  %vm307_vm12 = vcmp.ne.s32.totalorder %v305_v41, 0 }
   0xa   :  { %552 = vmatpush3.msra.mxu1 %v109_v7  ;;  %vm684_vm6 = vcmp.ne.s32.totalorder %v304_v30, 0 }
   0xb   :  { %563 = vmatprep.subr.bf16.mxu1 %v607_v6 }
  0xc4   :  { %v544_v8 = vpop.f32.mrf.mxu0 }
  0xc5   :  { %557 = vmatpush3.xpose.msk.msra.mxu0 %vm113_vm2, %v544_v8 }
  0xc6   :  { %v99_v9 = vpop.f32.mrf.mxu0  ;;  %558 = vmatprep.subr.mxu0 %v607_v6 }
  0xc7   :  { %v666_v10 = vpack.c.bf16 %v544_v8, %v99_v9  ;;  %553 = vmatprep.mubr.msk.f32.mxu1 %vm113_vm2, %v99_v9 }
  0xc8   :  { %554 = vmatmul.mubr.msk.f32.vlgmr.msra.gmra.mxu1 %vm113_vm2, %v544_v8 }
  0xc9   :  { %559 = vmatpush3.xpose.msk.msra.mxu0 %vm113_vm2, %v99_v9  ;;  %564 = vmatpush3.bf16.msra.mxu1 %v666_v10 }
  0xca   :  { %569 = vmatprep.subr.bf16.mxu0 %v607_v6  ;;  %565 = vmatprep.mubr.msk.bf16.mxu1 %vm608_vm1, %v607_v6 }
  0xcc   :  { %561 = vmatmul.mubr.msk.f32.vlgmr.msra.gmra.mxu0 %vm113_vm2, %v198_v11 }
  0xcd   :  { %571 = vmatprep.mubr.msk.bf16.mxu0 %vm608_vm1, %v607_v6 }
 0x188   :  { %v555_v14 = vpop.f32.mrf.mxu1 }
 0x189   :  { %197 = vst.msk [vmem:[#allocation2 + $0x8] sm:$0xff] %vm195_vm3, %v555_v14 }
 0x18a   :  { %v186_v15 = vpop.f32.mrf.mxu1 }
 0x18b   :  { %196 = vst.msk [vmem:[#allocation2] sm:$0xff] %vm195_vm3, %v186_v15 }
 0x18c   :  { %v268_v16 = vpop.f32.mrf.mxu0 }
 0x18d   :  { %v293_v26 = vrot.slane %v268_v16, %v292_v23  ;;  %v401_v28 = vrot.slane %v268_v16, %v400_v24 }
 0x18e   :  { %v562_v17 = vpop.f32.mrf.mxu0 }
 0x190   :  { %v275_v18 = vld [vmem:[#allocation2 + $0x8] sm:$0xff] }
 0x191   :  { %287 = vperm.xlu1 %582, %v275_v18  }
 0x192   :  { %v274_v19 = vld [vmem:[#allocation2] sm:$0xff] }
 0x193   :  { %391 = vperm.xlu0 %581, %v274_v19  }
 0x195   :  { %282 = vperm.xlu1 %582, %v274_v19  }
 0x197   :  { %395 = vperm.xlu0 %581, %v275_v18  }
 0x20c   :  { %v288_v29 = vpop.permute.xlu1 %287 }
 0x20d   :  { %v295_v31 = vadd.f32 %v293_v26, %v288_v29 }
 0x20e   :  { %v392_v32 = vpop.permute.xlu0 %391 }
 0x20f   :  { %v402_v33 = vadd.f32 %v401_v28, %v392_v32  ;;  %v299_v39 = vmul.f32 0.2, %v295_v31  ;;  %vm297_vm10 = vcmp.gt.f32.partialorder %v295_v31, 0.0 }
 0x210   :  { %v283_v35 = vpop.permute.xlu1 %282 }
 0x211   :  { %v406_v36 = vmul.f32 0.2, %v402_v33  ;;  %v294_v37 = vadd.f32 %v293_v26, %v283_v35  ;;  %vm404_vm7 = vcmp.gt.f32.partialorder %v402_v33, 0.0  ;;  %v301_v51 = vsel %vm297_vm10, %v295_v31, %v299_v39 }
 0x212   :  { %v396_v40 = vpop.permute.xlu0 %395  ;;  %v309_v55 = vsel %vm307_vm12, %v301_v51, -9e+15 }
 0x213   :  { %v298_v42 = vmul.f32 0.2, %v294_v37  ;;  %v403_v43 = vadd.f32 %v401_v28, %v396_v40  ;;  %v408_v44 = vsel %vm404_vm7, %v402_v33, %v406_v36  ;;  %vm296_vm8 = vcmp.gt.f32.partialorder %v294_v37, 0.0 }
 0x214   :  { %v410_v45 = vsel %vm684_vm6, %v408_v44, -9e+15  ;;  %v314_v56 = vsel %vm310_vm9, %v309_v55, -inf }
 0x215   :  { %v407_v46 = vmul.f32 0.2, %v403_v43  ;;  %v412_v47 = vsel %vm310_vm9, %v410_v45, -inf  ;;  %v300_v48 = vsel %vm296_vm8, %v294_v37, %v298_v42  ;;  %vm405_vm11 = vcmp.gt.f32.partialorder %v403_v43, 0.0 }
 0x216   :  { %413 = vmax.xlane.f32.xlu0 %v412_v47  ;;  %v308_v49 = vsel %vm684_vm6, %v300_v48, -9e+15 }
 0x217   :  { %v409_v50 = vsel %vm405_vm11, %v403_v43, %v407_v46  ;;  %v311_v53 = vsel %vm310_vm9, %v308_v49, -inf }
 0x218   :  { %v411_v52 = vsel %vm307_vm12, %v409_v50, -9e+15 }
 0x219   :  { %v415_v54 = vsel %vm310_vm9, %v411_v52, -inf }
 0x21a   :  { %312 = vmax.xlane.f32.xlu0 %v311_v53  ;;  %416 = vmax.xlane.f32.xlu1 %v415_v54 }
 0x21e   :  { %315 = vmax.xlane.f32.xlu0 %v314_v56 }
 0x29f   :  { %v414_v57 = vpop.xlane.xlu0 %413 }
 0x2a0   :  { %v418_v58 = vsub.f32 %v410_v45, %v414_v57 }
 0x2a2   :  { %v420_v59 = vmul.f32 1.442695, %v418_v58 }
 0x2a3   :  { %v417_v60 = vpop.xlane.xlu1 %416  ;;  %v313_v61 = vpop.xlane.xlu0 %312 }
 0x2a4   :  { %583 = vpow2.f32 %v420_v59  ;;  %v419_v62 = vsub.f32 %v411_v52, %v417_v60  ;;  %v317_v63 = vsub.f32 %v308_v49, %v313_v61 }
 0x2a6   :  { %v422_v0 = vmul.f32 1.442695, %v419_v62  ;;  %v319_v1 = vmul.f32 1.442695, %v317_v63 }
 0x2a7   :  { %v316_v2 = vpop.xlane.xlu0 %315 }
 0x2a8   :  { %585 = vpow2.f32 %v422_v0  ;;  %v318_v3 = vsub.f32 %v309_v55, %v316_v2 }
 0x2a9   :  { %587 = vpow2.f32 %v319_v1 }
 0x2aa   :  { %v321_v4 = vmul.f32 1.442695, %v318_v3 }
 0x2ac   :  { %589 = vpow2.f32 %v321_v4 }
 0x2b1   :  { %v584_v5 = vpop.eup %583 }
 0x2b2   :  { %v424_v6 = vsel %vm310_vm9, %v584_v5, 0.0 }
 0x2b3   :  { %425 = vadd.xlane.f32.xlu1 %v424_v6 }
 0x2b5   :  { %v586_v7 = vpop.eup %585 }
 0x2b6   :  { %v427_v8 = vsel %vm310_vm9, %v586_v7, 0.0  ;;  %v588_v9 = vpop.eup %587 }
 0x2b7   :  { %428 = vadd.xlane.f32.xlu0 %v427_v8  ;;  %v323_v11 = vsel %vm310_vm9, %v588_v9, 0.0 }
 0x2b9   :  { %v590_v12 = vpop.eup %589 }
 0x2ba   :  { %v326_v13 = vsel %vm310_vm9, %v590_v12, 0.0 }
 0x2bb   :  { %324 = vadd.xlane.f32.xlu0 %v323_v11 }
 0x2bf   :  { %327 = vadd.xlane.f32.xlu0 %v326_v13 }
 0x2c4   :  { %436 = vrot.lane.b32.xlu1 %v666_v10, %s611_s4 }
 0x33c   :  { %v426_v14 = vpop.xlane.xlu1 %425 }
 0x33d   :  { %591 = vrcp.f32 %v426_v14 }
 0x340   :  { %v429_v15 = vpop.xlane.xlu0 %428  ;;  %v437_v16 = vpop.permute.xlu1 %436 }
 0x341   :  { %593 = vrcp.f32 %v429_v15  ;;  %570 = vmatpush3.bf16.msra.mxu0 %v437_v16 }
 0x344   :  { %v325_v17 = vpop.xlane.xlu0 %324 }
 0x345   :  { %595 = vrcp.f32 %v325_v17 }
 0x348   :  { %v328_v18 = vpop.xlane.xlu0 %327 }
 0x349   :  { %597 = vrcp.f32 %v328_v18 }
 0x34a   :  { %v592_v19 = vpop.eup %591 }
 0x34b   :  { %v432_v21 = vmul.f32 %v592_v19, %v584_v5 }
 0x34e   :  { %v594_v20 = vpop.eup %593 }
 0x34f   :  { %v433_v22 = vmul.f32 %v594_v20, %v586_v7 }
 0x351   :  { %v434_v23 = vpack.c.bf16 %v433_v22, %v432_v21 }
 0x352   :  { %v596_v24 = vpop.eup %595 }
 0x353   :  { %572 = vmatmul.mubr.msk.bf16.vlgmr.msra.gmra.mxu0 %vm310_vm9, %v434_v23  ;;  %v331_v10 = vmul.f32 %v596_v24, %v588_v9 }
 0x356   :  { %v598_v25 = vpop.eup %597 }
 0x357   :  { %v332_v26 = vmul.f32 %v598_v25, %v590_v12 }
 0x359   :  { %v333_v27 = vpack.c.bf16 %v332_v26, %v331_v10 }
 0x35b   :  { %566 = vmatmul.mubr.msk.bf16.vlgmr.msra.gmra.mxu1 %vm310_vm9, %v333_v27 }
 0x413   :  { %v476_v28 = vpop.f32.mrf.mxu0 }
 0x414   :  { %v485_v29 = vmin.f32 %v476_v28, 0.0  ;;  %vm483_vm13 = vcmp.gt.f32.partialorder %v476_v28, 0.0 }
 0x415   :  { %v573_v30 = vpop.f32.mrf.mxu0 }
 0x416   :  { %v487_v31 = vmul.f32 1.442695, %v485_v29 }
 0x417   :  { %v479_v32 = vpop.f32.mrf.mxu0 }
 0x418   :  { %599 = vpow2.f32 %v487_v31  ;;  %v486_v33 = vmin.f32 %v479_v32, 0.0  ;;  %vm484_vm14 = vcmp.gt.f32.partialorder %v479_v32, 0.0 }
 0x419   :  { %v574_v34 = vpop.f32.mrf.mxu0 }
 0x41a   :  { %v489_v35 = vmul.f32 1.442695, %v486_v33 }
 0x41b   :  { %v371_v36 = vpop.f32.mrf.mxu1 }
 0x41c   :  { %601 = vpow2.f32 %v489_v35  ;;  %v380_v46 = vmin.f32 %v371_v36, 0.0  ;;  %vm378_vm15 = vcmp.gt.f32.partialorder %v371_v36, 0.0 }
 0x41d   :  { %v567_v37 = vpop.f32.mrf.mxu1 }
 0x41e   :  { %v382_v47 = vmul.f32 1.442695, %v380_v46 }
 0x41f   :  { %v374_v38 = vpop.f32.mrf.mxu1 }
 0x420   :  { %v381_v48 = vmin.f32 %v374_v38, 0.0  ;;  %603 = vpow2.f32 %v382_v47  ;;  %vm379_vm0 = vcmp.gt.f32.partialorder %v374_v38, 0.0 }
 0x421   :  { %v568_v39 = vpop.f32.mrf.mxu1 }
 0x422   :  { %v384_v49 = vmul.f32 1.442695, %v381_v48 }
 0x424   :  { %605 = vpow2.f32 %v384_v49 }
 0x425   :  { %v600_v40 = vpop.eup %599 }
 0x426   :  { %v522_v41 = vadd.f32 -1.0, %v600_v40 }
 0x428   :  { %v493_v42 = vsel %vm483_vm13, %v476_v28, %v522_v41 }
 0x429   :  { %v602_v43 = vpop.eup %601  ;;  %497 = vrot.lane.b32.xlu0 %v493_v42, %s612_s9 }
 0x42a   :  { %v523_v44 = vadd.f32 -1.0, %v602_v43 }
 0x42c   :  { %v494_v45 = vsel %vm484_vm14, %v479_v32, %v523_v44 }
 0x42d   :  { %499 = vrot.lane.b32.xlu1 %v494_v45, %s612_s9  ;;  %v604_v50 = vpop.eup %603 }
 0x42e   :  { %v519_v51 = vadd.f32 -1.0, %v604_v50 }
 0x430   :  { %v388_v53 = vsel %vm378_vm15, %v371_v36, %v519_v51 }
 0x431   :  { %v606_v52 = vpop.eup %605 }
 0x432   :  { %v520_v54 = vadd.f32 -1.0, %v606_v52 }
 0x434   :  { %v389_v57 = vsel %vm379_vm0, %v374_v38, %v520_v54 }
 0x49b   :  { %v498_v55 = vpop.permute.xlu0 %497 }
 0x49c   :  { %v503_v56 = vsel %vm310_vm9, %v388_v53, %v498_v55 }
 0x49d   :  { %505 = vst.msk [vmem:[%s718_s5] sm:$0xff] %vm113_vm2, %v503_v56 }
 0x49f   :  { %v500_v58 = vpop.permute.xlu1 %499 }
 0x4a0   :  { %v504_v59 = vsel %vm310_vm9, %v389_v57, %v500_v58 }
 0x4a1   :  { %506 = vst.msk [vmem:[%s718_s5 + $0x8] sm:$0xff] %vm113_vm2, %v504_v59 }

// kernel: gat_ode_func_forward.3
= control target key start
LH: loop header
LB: loop body
LE: loop exit
PB: predicated region body
PF: predicated region fallthrough
CT: control target
= control target key end

     0   :  { %vm30_vm0 = vcmask 261120   ;;  %s759_s0 = inlined_call_operand.vmem [shape: f32[16,32], index: 0, kind: input, shape index: {}]   ;;  %s760_s1 = inlined_call_operand.vmem [shape: f32[32,16], index: 1, kind: input, shape index: {}]   ;;  %s761_s2 = inlined_call_operand.vmem [shape: f32[16,2], index: 2, kind: input, shape index: {}]   ;;  %s762_s3 = inlined_call_operand.vmem [shape: f32[2,16], index: 3, kind: input, shape index: {}]   ;;  %s763_s4 = inlined_call_operand.vmem [shape: bf16[16,16], index: 4, kind: input, shape index: {}]   ;;  %s764_s5 = inlined_call_operand.hbm [shape: f32[16,16], index: 5, kind: output, shape index: {}]  }
   0x1   :  { %v29_v0 = vld [vmem:[%s760_s1 + $0x18] sm:$0xff]  ;;  %v28_v1 = vld [vmem:[%s760_s1 + $0x10] sm:$0xff]  ;;  %v24_v2 = vld [vmem:[%s759_s0] sm:$0xff] }
   0x2   :  { %555 = vmatprep.subr.mxu0 %v29_v0  ;;  %v27_v3 = vld [vmem:[%s760_s1 + $0x8] sm:$0xff]  ;;  %563 = vmatprep.mubr.msk.f32.mxu0 %vm30_vm0, %v24_v2 }
   0x3   :  { %556 = vmatpush3.msra.mxu0 %v29_v0  ;;  %v114_v4 = vld [vmem:[%s761_s2 + $0x8] sm:$0xff] }
   0x4   :  { %10 = vsyncpa [#allocation4], 0  ;;  %557 = vmatprep.subr.mxu0 %v28_v1  ;;  %566 = vmatprep.subr.mxu1 %v114_v4  ;;  %v26_v5 = vld [vmem:[%s760_s1] sm:$0xff]  ;;  %v25_v6 = vld [vmem:[%s759_s0 + $0x8] sm:$0xff]  ;;  %v648_v8 = vmov 0.0   ;;  %vm649_vm1 = vmmov 0   ;;  %v292_v21 = vlaneseq }
   0x5   :  { %558 = vmatpush3.msra.mxu0 %v28_v1  ;;  %567 = vmatpush3.msra.mxu1 %v114_v4  ;;  %v113_v7 = vld [vmem:[%s761_s2] sm:$0xff]  ;;  %vm115_vm2 = vcmask 130048   ;;  %v650_v13 = vmov 0   ;;  %v651_v14 = vmov 1   ;;  %vm197_vm3 = vcmask 15360   ;;  %s653_s11 = smov 8  }
   0x6   :  { %559 = vmatprep.subr.mxu0 %v27_v3  ;;  %568 = vmatprep.subr.mxu1 %v113_v7  ;;  %v200_v12 = vld [vmem:[%s762_s3] sm:$0x3]  ;;  %v293_v22 = vshrl.u32 %v292_v21, 7  ;;  %v279_v26 = vld [vmem:[%s763_s4 + $0x4] sm:$0xf]  ;;  %vm504_vm14 = vcmask 64512  }
   0x7   :  { %560 = vmatpush3.msra.mxu0 %v27_v3  ;;  %569 = vmatpush3.msra.mxu1 %v113_v7  ;;  %v278_v23 = vld [vmem:[%s763_s4] sm:$0xf]  ;;  %vm281_vm5 = vcmp.gt.bf16.partialorder %v279_v26, 0  ;;  %s652_s4 = smov 120   ;;  %s654_s12 = smov [#allocation3]  }
   0x8   :  { %561 = vmatprep.subr.mxu0 %v26_v5  ;;  %573 = vmatprep.subr.mxu1 %v648_v8  ;;  %v294_v24 = vsub.s32 0, %v293_v22  ;;  %v401_v25 = vsub.s32 1, %v293_v22  ;;  %vm280_vm4 = vcmp.gt.bf16.partialorder %v278_v23, 0  ;;  %v305_v35 = vsel %vm281_vm5, 65537, %v650_v13  ;;  %s514_s13 = sshll.u32 %s654_s12, 4  ;;  %s515_s13 = int_to_ptr.vmem [resolvable:$true] %s514_s13 }
   0x9   :  { %562 = vmatpush3.msra.mxu0 %v26_v5  ;;  %601 = vset.pattern.permute.xlu1 %v650_v13  ;;  %v304_v28 = vsel %vm280_vm4, 65537, %v650_v13  ;;  %v307_v42 = vunpack.c.l.b16 %v305_v35  ;;  %s626_s14 = scalar_lea.vmem %s515_s13, 256  ;;  %p631_p1 = scmp.lt.s32.totalorder %s515_s13, %s515_s13 }
   0xa   :  { %564 = vmatmul.mubr.msk.f32.vlgmr.msra.gmra.mxu0 %vm30_vm0, %v25_v6  ;;  %580 = vmatprep.subr.bf16.mxu0 %v648_v8  ;;  %v306_v31 = vunpack.c.l.b16 %v304_v28  ;;  %p627_p0 = scmp.ne.s32.totalorder %s515_s13, %s626_s14  ;;  %p632_p2 = scmp.lt.s32.totalorder %s626_s14, %s626_s14 }
   0xb   :  { %582 = vmatprep.mubr.msk.bf16.mxu0 %vm649_vm1, %v648_v8  ;;  %600 = vset.pattern.permute.xlu0 %v651_v14  ;;  %vm309_vm11 = vcmp.ne.s32.totalorder %v307_v42, 0 }
   0xc   :  { %vm732_vm6 = vcmp.ne.s32.totalorder %v306_v31, 0  ;;  %p633_p3 = por %p632_p2, %p631_p1 }
   0xe   :  { %p634_p4 = pnand %p633_p3, %p627_p0 }
  0xca   :  { %v565_v9 = vpop.f32.mrf.mxu0 }
  0xcc   :  { %v103_v10 = vpop.f32.mrf.mxu0 }
  0xcd   :  { %v713_v11 = vpack.c.bf16 %v565_v9, %v103_v10  ;;  %570 = vmatprep.mubr.msk.f32.mxu1 %vm115_vm2, %v103_v10 }
  0xce   :  { %571 = vmatmul.mubr.msk.f32.vlgmr.msra.gmra.mxu1 %vm115_vm2, %v565_v9 }
  0xcf   :  { %574 = vmatpush3.xpose.msk.msra.mxu1 %vm115_vm2, %v565_v9  ;;  %581 = vmatpush3.bf16.msra.mxu0 %v713_v11 }
  0xd0   :  { %575 = vmatprep.subr.mxu1 %v648_v8  ;;  %577 = vmatprep.mubr.msk.f32.mxu1 %vm649_vm1, %v648_v8 }
  0xd3   :  { %576 = vmatpush3.xpose.msk.msra.mxu1 %vm115_vm2, %v103_v10 }
  0xd4   :  { %586 = vmatprep.subr.bf16.mxu1 %v648_v8 }
  0xd6   :  { %578 = vmatmul.mubr.msk.f32.vlgmr.msra.gmra.mxu1 %vm115_vm2, %v200_v12 }
  0xd7   :  { %588 = vmatprep.mubr.msk.bf16.mxu1 %vm649_vm1, %v648_v8 }
 0x18e   :  { %v572_v15 = vpop.f32.mrf.mxu1 }
 0x18f   :  { %199 = vst.msk [vmem:[#allocation2 + $0x8] sm:$0xff] %vm197_vm3, %v572_v15 }
 0x190   :  { %v188_v16 = vpop.f32.mrf.mxu1 }
 0x191   :  { %198 = vst.msk [vmem:[#allocation2] sm:$0xff] %vm197_vm3, %v188_v16 }
 0x196   :  { %v277_v17 = vld [vmem:[#allocation2 + $0x8] sm:$0xff]  ;;  %v270_v18 = vpop.f32.mrf.mxu1 }
 0x197   :  { %289 = vperm.xlu1 %601, %v277_v17   ;;  %v295_v27 = vrot.slane %v270_v18, %v294_v24  ;;  %v402_v29 = vrot.slane %v270_v18, %v401_v25 }
 0x198   :  { %v276_v19 = vld [vmem:[#allocation2] sm:$0xff]  ;;  %v579_v20 = vpop.f32.mrf.mxu1 }
 0x199   :  { %392 = vperm.xlu0 %600, %v276_v19  }
 0x19b   :  { %284 = vperm.xlu1 %601, %v276_v19  }
 0x19d   :  { %396 = vperm.xlu0 %600, %v277_v17  }
 0x212   :  { %v290_v30 = vpop.permute.xlu1 %289 }
 0x213   :  { %v297_v32 = vadd.f32 %v295_v27, %v290_v30 }
 0x214   :  { %v393_v33 = vpop.permute.xlu0 %392 }
 0x215   :  { %v403_v34 = vadd.f32 %v402_v29, %v393_v33  ;;  %v301_v40 = vmul.f32 0.2, %v297_v32  ;;  %vm299_vm9 = vcmp.gt.f32.partialorder %v297_v32, 0.0 }
 0x216   :  { %v285_v36 = vpop.permute.xlu1 %284 }
 0x217   :  { %v407_v37 = vmul.f32 0.2, %v403_v34  ;;  %v296_v38 = vadd.f32 %v295_v27, %v285_v36  ;;  %vm405_vm7 = vcmp.gt.f32.partialorder %v403_v34, 0.0  ;;  %v303_v52 = vsel %vm299_vm9, %v297_v32, %v301_v40 }
 0x218   :  { %v397_v41 = vpop.permute.xlu0 %396  ;;  %v311_v56 = vsel %vm309_vm11, %v303_v52, -9e+15 }
 0x219   :  { %v300_v43 = vmul.f32 0.2, %v296_v38  ;;  %v404_v44 = vadd.f32 %v402_v29, %v397_v41  ;;  %v409_v45 = vsel %vm405_vm7, %v403_v34, %v407_v37  ;;  %vm298_vm8 = vcmp.gt.f32.partialorder %v296_v38, 0.0 }
 0x21a   :  { %v411_v46 = vsel %vm732_vm6, %v409_v45, -9e+15  ;;  %v315_v57 = vsel %vm115_vm2, %v311_v56, -inf }
 0x21b   :  { %v408_v47 = vmul.f32 0.2, %v404_v44  ;;  %v413_v48 = vsel %vm115_vm2, %v411_v46, -inf  ;;  %v302_v49 = vsel %vm298_vm8, %v296_v38, %v300_v43  ;;  %vm406_vm10 = vcmp.gt.f32.partialorder %v404_v44, 0.0 }
 0x21c   :  { %414 = vmax.xlane.f32.xlu0 %v413_v48  ;;  %v310_v50 = vsel %vm732_vm6, %v302_v49, -9e+15 }
 0x21d   :  { %v410_v51 = vsel %vm406_vm10, %v404_v44, %v408_v47  ;;  %v312_v54 = vsel %vm115_vm2, %v310_v50, -inf }
 0x21e   :  { %v412_v53 = vsel %vm309_vm11, %v410_v51, -9e+15 }
 0x21f   :  { %v416_v55 = vsel %vm115_vm2, %v412_v53, -inf }
 0x220   :  { %313 = vmax.xlane.f32.xlu0 %v312_v54  ;;  %417 = vmax.xlane.f32.xlu1 %v416_v55 }
 0x224   :  { %316 = vmax.xlane.f32.xlu0 %v315_v57 }
 0x2a5   :  { %v415_v58 = vpop.xlane.xlu0 %414 }
 0x2a6   :  { %v419_v59 = vsub.f32 %v411_v46, %v415_v58 }
 0x2a8   :  { %v421_v60 = vmul.f32 1.442695, %v419_v59 }
 0x2a9   :  { %v418_v61 = vpop.xlane.xlu1 %417  ;;  %v314_v62 = vpop.xlane.xlu0 %313 }
 0x2aa   :  { %602 = vpow2.f32 %v421_v60  ;;  %v420_v63 = vsub.f32 %v412_v53, %v418_v61  ;;  %v318_v0 = vsub.f32 %v310_v50, %v314_v62 }
 0x2ac   :  { %v423_v1 = vmul.f32 1.442695, %v420_v63  ;;  %v320_v2 = vmul.f32 1.442695, %v318_v0 }
 0x2ad   :  { %v317_v3 = vpop.xlane.xlu0 %316 }
 0x2ae   :  { %604 = vpow2.f32 %v423_v1  ;;  %v319_v4 = vsub.f32 %v311_v56, %v317_v3 }
 0x2af   :  { %606 = vpow2.f32 %v320_v2 }
 0x2b0   :  { %v322_v5 = vmul.f32 1.442695, %v319_v4 }
 0x2b2   :  { %608 = vpow2.f32 %v322_v5 }
 0x2b7   :  { %v603_v6 = vpop.eup %602 }
 0x2b8   :  { %v425_v7 = vsel %vm115_vm2, %v603_v6, 0.0 }
 0x2b9   :  { %426 = vadd.xlane.f32.xlu1 %v425_v7 }
 0x2bb   :  { %v605_v8 = vpop.eup %604 }
 0x2bc   :  { %v428_v9 = vsel %vm115_vm2, %v605_v8, 0.0  ;;  %v607_v10 = vpop.eup %606 }
 0x2bd   :  { %429 = vadd.xlane.f32.xlu0 %v428_v9  ;;  %v324_v12 = vsel %vm115_vm2, %v607_v10, 0.0 }
 0x2bf   :  { %v609_v13 = vpop.eup %608 }
 0x2c0   :  { %v327_v14 = vsel %vm115_vm2, %v609_v13, 0.0 }
 0x2c1   :  { %325 = vadd.xlane.f32.xlu0 %v324_v12 }
 0x2c5   :  { %328 = vadd.xlane.f32.xlu0 %v327_v14 }
 0x2ca   :  { %437 = vrot.lane.b32.xlu1 %v713_v11, %s652_s4 }
 0x342   :  { %v427_v15 = vpop.xlane.xlu1 %426 }
 0x343   :  { %610 = vrcp.f32 %v427_v15 }
 0x346   :  { %v430_v16 = vpop.xlane.xlu0 %429  ;;  %v438_v17 = vpop.permute.xlu1 %437 }
 0x347   :  { %612 = vrcp.f32 %v430_v16  ;;  %587 = vmatpush3.bf16.msra.mxu1 %v438_v17 }
 0x34a   :  { %v326_v18 = vpop.xlane.xlu0 %325 }
 0x34b   :  { %614 = vrcp.f32 %v326_v18 }
 0x34e   :  { %v329_v19 = vpop.xlane.xlu0 %328 }
 0x34f   :  { %616 = vrcp.f32 %v329_v19 }
 0x350   :  { %v611_v20 = vpop.eup %610 }
 0x351   :  { %v433_v22 = vmul.f32 %v611_v20, %v603_v6 }
 0x354   :  { %v613_v21 = vpop.eup %612 }
 0x355   :  { %v434_v23 = vmul.f32 %v613_v21, %v605_v8 }
 0x357   :  { %v435_v24 = vpack.c.bf16 %v434_v23, %v433_v22 }
 0x358   :  { %v615_v25 = vpop.eup %614 }
 0x359   :  { %589 = vmatmul.mubr.msk.bf16.vlgmr.msra.gmra.mxu1 %vm115_vm2, %v435_v24  ;;  %v332_v11 = vmul.f32 %v615_v25, %v607_v10 }
 0x35c   :  { %v617_v26 = vpop.eup %616 }
 0x35d   :  { %v333_v27 = vmul.f32 %v617_v26, %v609_v13 }
 0x35f   :  { %v334_v28 = vpack.c.bf16 %v333_v27, %v332_v11 }
 0x361   :  { %583 = vmatmul.mubr.msk.bf16.vlgmr.msra.gmra.mxu0 %vm115_vm2, %v334_v28 }
 0x419   :  { %v477_v29 = vpop.f32.mrf.mxu1 }
 0x41a   :  { %v486_v30 = vmin.f32 %v477_v29, 0.0  ;;  %vm484_vm12 = vcmp.gt.f32.partialorder %v477_v29, 0.0 }
 0x41b   :  { %v590_v31 = vpop.f32.mrf.mxu1 }
 0x41c   :  { %v488_v32 = vmul.f32 1.442695, %v486_v30 }
 0x41d   :  { %v480_v33 = vpop.f32.mrf.mxu1 }
 0x41e   :  { %618 = vpow2.f32 %v488_v32  ;;  %v487_v34 = vmin.f32 %v480_v33, 0.0  ;;  %vm485_vm13 = vcmp.gt.f32.partialorder %v480_v33, 0.0 }
 0x41f   :  { %v591_v35 = vpop.f32.mrf.mxu1 }
 0x420   :  { %v490_v36 = vmul.f32 1.442695, %v487_v34 }
 0x421   :  { %v372_v37 = vpop.f32.mrf.mxu0 }
 0x422   :  { %620 = vpow2.f32 %v490_v36  ;;  %v381_v47 = vmin.f32 %v372_v37, 0.0  ;;  %vm379_vm15 = vcmp.gt.f32.partialorder %v372_v37, 0.0 }
 0x423   :  { %v584_v38 = vpop.f32.mrf.mxu0 }
 0x424   :  { %v383_v48 = vmul.f32 1.442695, %v381_v47 }
 0x425   :  { %v375_v39 = vpop.f32.mrf.mxu0 }
 0x426   :  { %v382_v49 = vmin.f32 %v375_v39, 0.0  ;;  %622 = vpow2.f32 %v383_v48  ;;  %vm380_vm0 = vcmp.gt.f32.partialorder %v375_v39, 0.0 }
 0x427   :  { %v585_v40 = vpop.f32.mrf.mxu0 }
 0x428   :  { %v385_v50 = vmul.f32 1.442695, %v382_v49 }
 0x42a   :  { %624 = vpow2.f32 %v385_v50 }
 0x42b   :  { %v619_v41 = vpop.eup %618 }
 0x42c   :  { %v536_v42 = vadd.f32 -1.0, %v619_v41 }
 0x42e   :  { %v494_v43 = vsel %vm484_vm12, %v477_v29, %v536_v42 }
 0x42f   :  { %v621_v44 = vpop.eup %620  ;;  %498 = vrot.lane.b32.xlu0 %v494_v43, %s653_s11 }
 0x430   :  { %v537_v45 = vadd.f32 -1.0, %v621_v44 }
 0x432   :  { %v495_v46 = vsel %vm485_vm13, %v480_v33, %v537_v45 }
 0x433   :  { %500 = vrot.lane.b32.xlu1 %v495_v46, %s653_s11  ;;  %v623_v51 = vpop.eup %622 }
 0x434   :  { %v533_v52 = vadd.f32 -1.0, %v623_v51 }
 0x436   :  { %v389_v54 = vsel %vm379_vm15, %v372_v37, %v533_v52 }
 0x437   :  { %v625_v53 = vpop.eup %624 }
 0x438   :  { %v534_v55 = vadd.f32 -1.0, %v625_v53 }
 0x43a   :  { %v390_v58 = vsel %vm380_vm0, %v375_v39, %v534_v55 }
 0x4a1   :  { %v499_v56 = vpop.permute.xlu0 %498 }
 0x4a2   :  { %v505_v57 = vsel %vm504_vm14, %v389_v54, %v499_v56 }
 0x4a3   :  { %507 = vst.msk [vmem:[#allocation3] sm:$0xff] %vm115_vm2, %v505_v57 }
 0x4a5   :  { %v501_v59 = vpop.permute.xlu1 %500 }
 0x4a6   :  { %v506_v60 = vsel %vm504_vm14, %v390_v58, %v501_v59 }
 0x4a7   :  { %508 = vst.msk [vmem:[#allocation3 + $0x8] sm:$0xff] %vm115_vm2, %v506_v60 }
 0x4a8   :  { %637 = shalt.err (!%p634_p4)
}
 0x4a9   :  { %s655_s15 = smov 128  }
 0x4aa   :  { %520 = dma.vmem_to_hbm [thread:$0]  %s515_s13, 256, %s764_s5, [#allocation4], %s655_s15, %s655_s15, %s653_s11  }
 0x4ab   :  { %646 = dma.done.wait [#allocation4], 256  }
 0x4ac   :  { %647 = vsyncadd [#allocation4], 4294967040 }
 0x4ad   :  { %524 = vsyncpa [#allocation4], 1 }

</bundles_post_ra>
